<compile_context>
chip_gen: v7x
topology: tpu7x:2x2x1
jax: 0.10.0
libtpu: 0.0.40
codegen_flags: <defaults>
</compile_context>

<pallas_src>
import jax
import jax.numpy as jnp
from jax import lax
from jax.experimental import pallas as pl
from jax.experimental.pallas import tpu as pltpu


SUB = 512  # inner compute sub-tile (lanes) -> intermediates stay in vregs


def _round_up(x, m):
    return ((x + m - 1) // m) * m


def _tile_cap():
    """Per-generation batch-tile cap (lanes): large enough to amortize the
    ~0.35us/grid-step overhead against 24 B/lane of HBM traffic, small enough
    to stay comfortably inside every generation's scoped-VMEM default."""
    try:
        kind = jax.devices()[0].device_kind.lower()
    except Exception:
        return 16384
    if "v5" in kind:      # v5e: ~0.8 TB/s HBM, 16 MiB default scoped VMEM
        return 16384
    return 32768          # v6e / v7x (and newer): higher HBM BW -> bigger tiles


def _choose_tiling(B):
    """Pick (tb, Bp): tb a multiple of SUB, capped per generation, and chosen
    so the grid has >= 2 steps whenever B allows (v7x megacore sharding)."""
    cap = _tile_cap()
    target = _round_up(pl.cdiv(B, 2), SUB)   # >= 2 grid steps when B > SUB
    tb = max(SUB, min(cap, target))
    Bp = _round_up(B, tb)
    return tb, Bp


def mlp_kernel(x_ref, w1_ref, b1_ref, w2_ref, b2_ref, w3_ref, b3_ref, o_ref):
    # x_ref: (2, TB)  feature-major input tile (batch on lanes)
    # wN_ref: (out_N, in_N)  PyTorch-layout weights, resident in VMEM
    # bN_ref: (out_N, 1)     biases, broadcast along the lane (batch) axis
    # o_ref: (4, TB)
    w1 = w1_ref[...]     # (10, 2)
    b1 = b1_ref[...]     # (10, 1)
    w2 = w2_ref[...]     # (20, 10)
    b2 = b2_ref[...]     # (20, 1)
    w3 = w3_ref[...]     # (4, 20)
    b3 = b3_ref[...]     # (4, 1)

    tb = x_ref.shape[1]
    n_sub = tb // SUB    # static (block shape is static); TB is a multiple of SUB

    def body(s, carry):
        start = pl.multiple_of(s * SUB, SUB)
        xs = x_ref[:, pl.ds(start, SUB)]                       # (2, SUB)

        # ---- linear_1 + ReLU (dropout_1 = identity in eval mode) ----------
        # K=2 matmul is >99% MXU padding -> VPU broadcast mul-adds instead.
        z1 = w1[:, 0:1] * xs[0:1, :] + w1[:, 1:2] * xs[1:2, :] + b1   # (10, SUB)
        a1 = jnp.maximum(z1, 0.0)

        # ---- linear_2 + ReLU (dropout_2 = identity in eval mode) ----------
        z2 = jnp.dot(w2, a1, preferred_element_type=jnp.float32) + b2  # (20, SUB)
        a2 = jnp.maximum(z2, 0.0)

        # ---- linear_3 (logits), stored straight to the lane-dense output --
        o_ref[:, pl.ds(start, SUB)] = (
            jnp.dot(w3, a2, preferred_element_type=jnp.float32) + b3)  # (4, SUB)
        return carry

    lax.fori_loop(0, n_sub, body, 0, unroll=True)


def nnet_layers_forward_fm(xT, params):
    """Feature-major entry point: xT (2, B) float32 -> logits^T (4, B).

    This is the preferred contract: no row-major pad/transpose passes are
    performed (the review's biggest wrapper-side HBM saving)."""
    w1, b1 = params["w1"], params["b1"]
    w2, b2 = params["w2"], params["b2"]
    w3, b3 = params["w3"], params["b3"]

    B = xT.shape[1]
    out_features = w3.shape[0]

    tb, Bp = _choose_tiling(B)
    if Bp != B:
        xT = jnp.pad(xT, ((0, 0), (0, Bp - B)))       # zero-pad batch (lanes)
    grid = (Bp // tb,)

    # Biases as column vectors -> broadcast along lanes inside the kernel.
    b1c, b2c, b3c = b1[:, None], b2[:, None], b3[:, None]

    const = lambda i: (0, 0)   # weights / biases resident across all steps

    weight_bytes = 4 * (w1.size + b1.size + w2.size + b2.size + w3.size + b3.size)
    cost = pl.CostEstimate(
        flops=600 * Bp,                      # 2*(2*10 + 10*20 + 20*4) per sample
        transcendentals=0,
        bytes_accessed=24 * Bp + int(weight_bytes),
    )

    yT = pl.pallas_call(
        mlp_kernel,
        out_shape=jax.ShapeDtypeStruct((out_features, Bp), jnp.float32),
        grid_spec=pltpu.PrefetchScalarGridSpec(
            num_scalar_prefetch=0,
            grid=grid,
            in_specs=[
                pl.BlockSpec((2, tb), lambda i: (0, i)),       # x^T batch tile
                pl.BlockSpec(w1.shape, const),                 # (10, 2)
                pl.BlockSpec((b1.shape[0], 1), const),         # (10, 1)
                pl.BlockSpec(w2.shape, const),                 # (20, 10)
                pl.BlockSpec((b2.shape[0], 1), const),         # (20, 1)
                pl.BlockSpec(w3.shape, const),                 # (4, 20)
                pl.BlockSpec((b3.shape[0], 1), const),         # (4, 1)
            ],
            out_specs=pl.BlockSpec((out_features, tb), lambda i: (0, i)),
        ),
        compiler_params=pltpu.CompilerParams(
            dimension_semantics=("parallel",),
        ),
        cost_estimate=cost,
    )(xT, w1, b1c, w2, b2c, w3, b3c)

    return yT[:, :B]


def nnet_layers_forward(x, params, *, min_pallas_batch=4096):
    """Row-major entry point: x (B, 2) float32 -> logits (B, 4).

    Small batches dispatch to the fused-XLA path (the Pallas call only wins
    once B amortizes launch overhead + the two row-major layout passes)."""
    B = x.shape[0]
    if B < min_pallas_batch:
        return reference_forward(x, params)
    # TODO(synk): for a fully fused pipeline, make feature-major (2,B)/(4,B)
    # the producer/consumer contract (nnet_layers_forward_fm) and drop these
    # two wrapper-side HBM transpose passes.
    yT = nnet_layers_forward_fm(x.T, params)
    return yT.T


def init_params(key):
    """Deterministic init mimicking PyTorch Linear default:
    U(-1/sqrt(fan_in), 1/sqrt(fan_in)); weights stored PyTorch-style (out, in)."""
    def linear(key, fan_in, fan_out):
        kw, kb = jax.random.split(key)
        bound = 1.0 / jnp.sqrt(float(fan_in))
        w = jax.random.uniform(kw, (fan_out, fan_in), jnp.float32, -bound, bound)
        b = jax.random.uniform(kb, (fan_out,), jnp.float32, -bound, bound)
        return w, b

    k1, k2, k3 = jax.random.split(key, 3)
    w1, b1 = linear(k1, 2, 10)
    w2, b2 = linear(k2, 10, 20)
    w3, b3 = linear(k3, 20, 4)
    return {"w1": w1, "b1": b1, "w2": w2, "b2": b2, "w3": w3, "b3": b3}


def reference_forward(x, params):
    """Plain-JAX reference (eval-mode dropout = identity)."""
    a1 = jnp.maximum(x @ params["w1"].T + params["b1"], 0.0)
    a2 = jnp.maximum(a1 @ params["w2"].T + params["b2"], 0.0)
    return a2 @ params["w3"].T + params["b3"]


if __name__ == "__main__":
    key = jax.random.PRNGKey(0)
    kx, kp = jax.random.split(key)
    params = init_params(kp)

    # Small example batch, forced through the Pallas path to exercise the kernel.
    batch = 8
    x = jax.random.normal(kx, (batch, 2), dtype=jnp.float32)
    y = jax.block_until_ready(nnet_layers_forward(x, params, min_pallas_batch=0))
    y_ref = reference_forward(x, params)
    assert y.shape == (batch, 4)
    assert jnp.allclose(y, y_ref, atol=1e-5, rtol=1e-5)

    # Non-multiple batch exercising the multi-step grid + padding slice-off.
    x_mid = jax.random.normal(jax.random.PRNGKey(1), (1000, 2), dtype=jnp.float32)
    y_mid = jax.block_until_ready(nnet_layers_forward(x_mid, params, min_pallas_batch=0))
    assert y_mid.shape == (1000, 4)
    assert jnp.allclose(y_mid, reference_forward(x_mid, params), atol=1e-5, rtol=1e-5)

    # Large batch: default dispatch uses the kernel with big lane-dense tiles
    # (>= 2 grid steps for v7x megacore) + unrolled in-kernel sub-tiling.
    x_big = jax.random.normal(jax.random.PRNGKey(2), (100_000, 2), dtype=jnp.float32)
    y_big = jax.block_until_ready(nnet_layers_forward(x_big, params))
    assert y_big.shape == (100_000, 4)
    assert jnp.allclose(y_big, reference_forward(x_big, params), atol=1e-4, rtol=1e-4)

    print("KERNEL_OK")
</pallas_src>

<mosaic_0001>
module attributes {stable_mosaic.version = 11 : i64} {
  func.func @mlp_kernel(%arg0: i32, %arg1: memref<2x512xf32, #tpu.memory_space<vmem>>, %arg2: memref<10x2xf32, #tpu.memory_space<vmem>>, %arg3: memref<10x1xf32, #tpu.memory_space<vmem>>, %arg4: memref<20x10xf32, #tpu.memory_space<vmem>>, %arg5: memref<20x1xf32, #tpu.memory_space<vmem>>, %arg6: memref<4x20xf32, #tpu.memory_space<vmem>>, %arg7: memref<4x1xf32, #tpu.memory_space<vmem>>, %arg8: memref<4x512xf32, #tpu.memory_space<vmem>>) attributes {dimension_semantics = [#tpu.dimension_semantics<parallel>], iteration_bounds = array<i64: 1>, scalar_prefetch = 0 : i64, scratch_operands = 0 : i64, tpu.core_type = #tpu.core_type<tc>, window_params = [{transform_indices = @transform_0, window_bounds = array<i64: 2, 512>}, {pipeline_mode = #tpu.pipeline_mode<synchronous>, transform_indices = @transform_1, window_bounds = array<i64: 10, 2>}, {pipeline_mode = #tpu.pipeline_mode<synchronous>, transform_indices = @transform_2, window_bounds = array<i64: 10, 1>}, {pipeline_mode = #tpu.pipeline_mode<synchronous>, transform_indices = @transform_3, window_bounds = array<i64: 20, 10>}, {pipeline_mode = #tpu.pipeline_mode<synchronous>, transform_indices = @transform_4, window_bounds = array<i64: 20, 1>}, {pipeline_mode = #tpu.pipeline_mode<synchronous>, transform_indices = @transform_5, window_bounds = array<i64: 4, 20>}, {pipeline_mode = #tpu.pipeline_mode<synchronous>, transform_indices = @transform_6, window_bounds = array<i64: 4, 1>}, {transform_indices = @transform_7, window_bounds = array<i64: 4, 512>}]} {
    %c0 = arith.constant 0 : index
    %c0_0 = arith.constant 0 : index
    %0 = vector.load %arg2[%c0, %c0_0] : memref<10x2xf32, #tpu.memory_space<vmem>>, vector<10x2xf32>
    %c0_1 = arith.constant 0 : index
    %c0_2 = arith.constant 0 : index
    %1 = vector.load %arg3[%c0_1, %c0_2] : memref<10x1xf32, #tpu.memory_space<vmem>>, vector<10x1xf32>
    %c0_3 = arith.constant 0 : index
    %c0_4 = arith.constant 0 : index
    %2 = vector.load %arg4[%c0_3, %c0_4] : memref<20x10xf32, #tpu.memory_space<vmem>>, vector<20x10xf32>
    %c0_5 = arith.constant 0 : index
    %c0_6 = arith.constant 0 : index
    %3 = vector.load %arg5[%c0_5, %c0_6] : memref<20x1xf32, #tpu.memory_space<vmem>>, vector<20x1xf32>
    %c0_7 = arith.constant 0 : index
    %c0_8 = arith.constant 0 : index
    %4 = vector.load %arg6[%c0_7, %c0_8] : memref<4x20xf32, #tpu.memory_space<vmem>>, vector<4x20xf32>
    %c0_9 = arith.constant 0 : index
    %c0_10 = arith.constant 0 : index
    %5 = vector.load %arg7[%c0_9, %c0_10] : memref<4x1xf32, #tpu.memory_space<vmem>>, vector<4x1xf32>
    %c0_i32 = arith.constant 0 : i32
    %c512_i32 = arith.constant 512 : i32
    %6 = arith.muli %c0_i32, %c512_i32 : i32
    %7 = tpu.assume_multiple %6, 512 : i32
    %c0_11 = arith.constant 0 : index
    %8 = arith.index_cast %7 : i32 to index
    %9 = vector.load %arg1[%c0_11, %8] : memref<2x512xf32, #tpu.memory_space<vmem>>, vector<2x512xf32>
    %10 = vector.extract_strided_slice %0 {offsets = [0, 0], sizes = [10, 1], strides = [1, 1]} : vector<10x2xf32> to vector<10x1xf32>
    %11 = vector.extract_strided_slice %9 {offsets = [0, 0], sizes = [1, 512], strides = [1, 1]} : vector<2x512xf32> to vector<1x512xf32>
    %12 = vector.broadcast %10 : vector<10x1xf32> to vector<10x512xf32>
    %13 = vector.broadcast %11 : vector<1x512xf32> to vector<10x512xf32>
    %14 = arith.mulf %12, %13 : vector<10x512xf32>
    %15 = vector.extract_strided_slice %0 {offsets = [0, 1], sizes = [10, 1], strides = [1, 1]} : vector<10x2xf32> to vector<10x1xf32>
    %16 = vector.extract_strided_slice %9 {offsets = [1, 0], sizes = [1, 512], strides = [1, 1]} : vector<2x512xf32> to vector<1x512xf32>
    %17 = vector.broadcast %15 : vector<10x1xf32> to vector<10x512xf32>
    %18 = vector.broadcast %16 : vector<1x512xf32> to vector<10x512xf32>
    %19 = arith.mulf %17, %18 : vector<10x512xf32>
    %20 = arith.addf %14, %19 : vector<10x512xf32>
    %21 = vector.broadcast %1 : vector<10x1xf32> to vector<10x512xf32>
    %22 = arith.addf %20, %21 : vector<10x512xf32>
    %cst = arith.constant 0.000000e+00 : f32
    %23 = vector.broadcast %cst : f32 to vector<10x512xf32>
    %24 = arith.maximumf %22, %23 : vector<10x512xf32>
    %cst_12 = arith.constant dense<0.000000e+00> : vector<20x512xf32>
    %25 = tpu.matmul %2, %24, %cst_12 {dimension_numbers = #tpu.dot_dimension_numbers<[1], [0], [0], [1], [0, 0, 1, 1], [], []>} : vector<20x10xf32>, vector<10x512xf32>, vector<20x512xf32> -> vector<20x512xf32>
    %26 = vector.broadcast %3 : vector<20x1xf32> to vector<20x512xf32>
    %27 = arith.addf %25, %26 : vector<20x512xf32>
    %cst_13 = arith.constant 0.000000e+00 : f32
    %28 = vector.broadcast %cst_13 : f32 to vector<20x512xf32>
    %29 = arith.maximumf %27, %28 : vector<20x512xf32>
    %cst_14 = arith.constant dense<0.000000e+00> : vector<4x512xf32>
    %30 = tpu.matmul %4, %29, %cst_14 {dimension_numbers = #tpu.dot_dimension_numbers<[1], [0], [0], [1], [0, 0, 1, 1], [], []>} : vector<4x20xf32>, vector<20x512xf32>, vector<4x512xf32> -> vector<4x512xf32>
    %31 = vector.broadcast %5 : vector<4x1xf32> to vector<4x512xf32>
    %32 = arith.addf %30, %31 : vector<4x512xf32>
    %c0_15 = arith.constant 0 : index
    %33 = arith.index_cast %7 : i32 to index
    %34 = vector.load %arg8[%c0_15, %33] : memref<4x512xf32, #tpu.memory_space<vmem>>, vector<4x512xf32>
    tpu.vector_store %arg8[%c0_15, %33], %32 {strides = array<i32>} : memref<4x512xf32, #tpu.memory_space<vmem>>, vector<4x512xf32>,
    %c1_i32 = arith.constant 1 : i32
    return
  }
  func.func @transform_0(%arg0: i32) -> (i32, i32) {
    %c0_i32 = arith.constant 0 : i32
    %c0_i32_0 = arith.constant 0 : i32
    return %c0_i32, %arg0 : i32, i32
  }
  func.func @transform_1(%arg0: i32) -> (i32, i32) {
    %c0_i32 = arith.constant 0 : i32
    %c0_i32_0 = arith.constant 0 : i32
    %c0_i32_1 = arith.constant 0 : i32
    return %c0_i32, %c0_i32_0 : i32, i32
  }
  func.func @transform_2(%arg0: i32) -> (i32, i32) {
    %c0_i32 = arith.constant 0 : i32
    %c0_i32_0 = arith.constant 0 : i32
    %c0_i32_1 = arith.constant 0 : i32
    return %c0_i32, %c0_i32_0 : i32, i32
  }
  func.func @transform_3(%arg0: i32) -> (i32, i32) {
    %c0_i32 = arith.constant 0 : i32
    %c0_i32_0 = arith.constant 0 : i32
    %c0_i32_1 = arith.constant 0 : i32
    return %c0_i32, %c0_i32_0 : i32, i32
  }
  func.func @transform_4(%arg0: i32) -> (i32, i32) {
    %c0_i32 = arith.constant 0 : i32
    %c0_i32_0 = arith.constant 0 : i32
    %c0_i32_1 = arith.constant 0 : i32
    return %c0_i32, %c0_i32_0 : i32, i32
  }
  func.func @transform_5(%arg0: i32) -> (i32, i32) {
    %c0_i32 = arith.constant 0 : i32
    %c0_i32_0 = arith.constant 0 : i32
    %c0_i32_1 = arith.constant 0 : i32
    return %c0_i32, %c0_i32_0 : i32, i32
  }
  func.func @transform_6(%arg0: i32) -> (i32, i32) {
    %c0_i32 = arith.constant 0 : i32
    %c0_i32_0 = arith.constant 0 : i32
    %c0_i32_1 = arith.constant 0 : i32
    return %c0_i32, %c0_i32_0 : i32, i32
  }
  func.func @transform_7(%arg0: i32) -> (i32, i32) {
    %c0_i32 = arith.constant 0 : i32
    %c0_i32_0 = arith.constant 0 : i32
    return %c0_i32, %arg0 : i32, i32
  }
}

</mosaic_0001>

<bundles_post_ra>
// kernel: tpu_custom_call.1
= control target key start
LH: loop header
LB: loop body
LE: loop exit
PB: predicated region body
PF: predicated region fallthrough
CT: control target
= control target key end

     0   :  { %v653_v1 = vmov 1   ;;  %v654_v2 = vmov 0   ;;  %s758_s0 = inlined_call_operand.vmem [shape: f32[2,512], index: 0, kind: input, shape index: {}]   ;;  %s759_s1 = inlined_call_operand.vmem [shape: f32[10,2], index: 1, kind: input, shape index: {}]   ;;  %s760_s2 = inlined_call_operand.vmem [shape: f32[10,1], index: 2, kind: input, shape index: {}]   ;;  %s761_s3 = inlined_call_operand.vmem [shape: f32[20,10], index: 3, kind: input, shape index: {}]   ;;  %s762_s4 = inlined_call_operand.vmem [shape: f32[20,1], index: 4, kind: input, shape index: {}]   ;;  %s763_s5 = inlined_call_operand.vmem [shape: f32[4,20], index: 5, kind: input, shape index: {}]   ;;  %s764_s6 = inlined_call_operand.vmem [shape: f32[4,1], index: 6, kind: input, shape index: {}]   ;;  %s765_s7 = inlined_call_operand.hbm [shape: f32[4,512], index: 7, kind: output, shape index: {}]  }
   0x1   :  { %v27_v0 = vld [vmem:[%s759_s1] sm:$0xff]  ;;  %627 = vset.pattern.permute.xlu1 %v653_v1  ;;  %626 = vset.pattern.permute.xlu0 %v654_v2  ;;  %v28_v3 = vld [vmem:[%s759_s1 + $0x8] sm:$0x3] }
   0x2   :  { %96 = vperm.xlu1 %627, %v27_v0   ;;  %42 = vperm.xlu0 %626, %v27_v0  }
   0x3   :  { %12 = vsyncpa [#allocation3], 0  ;;  %v29_v4 = vld [vmem:[%s760_s2] sm:$0xff]  ;;  %v30_v5 = vld [vmem:[%s760_s2 + $0x8] sm:$0x3]  ;;  %v655_v10 = vmov 0.0   ;;  %v51_v11 = vlaneseq }
   0x4   :  { %v34_v6 = vld [vmem:[%s762_s4] sm:$0xff]  ;;  %v35_v7 = vld [vmem:[%s762_s4 + $0x8] sm:$0xff]  ;;  %v36_v8 = vld [vmem:[%s762_s4 + $0x10] sm:$0xf]  ;;  %283 = vmatprep.mubr.f32.mxu0 %v655_v10  ;;  %366 = vmatprep.mubr.f32.mxu1 %v655_v10  ;;  %vm206_vm0 = vcmask 1041408   ;;  %vm656_vm1 = vmmov 1  }
   0x5   :  { %v38_v9 = vld [vmem:[%s764_s6] sm:$0xf]  ;;  %v52_v12 = vshrl.u32 %v51_v11, 7  ;;  %vm602_vm2 = vmpackc.low %vm206_vm0, %vm656_vm1  ;;  %vm196_vm3 = vcmask 80896   ;;  %vm406_vm4 = vcmask 1043456   ;;  %vm402_vm5 = vcmask 162816  }
   0x6   :  { %100 = vperm.xlu1 %627, %v28_v3   ;;  %47 = vperm.xlu0 %626, %v28_v3   ;;  %v39_v17 = vld [vmem:[%s758_s0] sm:$0xff]  ;;  %s657_s21 = smov [#allocation2]  }
   0x7   :  { %v105_v13 = vsub.s32 1, %v52_v12  ;;  %v109_v14 = vsub.s32 3, %v52_v12  ;;  %v113_v15 = vsub.s32 5, %v52_v12  ;;  %v117_v16 = vsub.s32 7, %v52_v12  ;;  %s577_s22 = sshll.u32 %s657_s21, 4  ;;  %s578_s22 = int_to_ptr.vmem [resolvable:$true] %s577_s22 }
   0x8   :  { %v53_v18 = vsub.s32 0, %v52_v12  ;;  %v57_v19 = vsub.s32 2, %v52_v12  ;;  %v61_v20 = vsub.s32 4, %v52_v12  ;;  %v65_v21 = vsub.s32 6, %v52_v12  ;;  %p634_p1 = scmp.lt.s32.totalorder %s578_s22, %s578_s22 }
   0x9   :  { %v106_v22 = vrot.slane %v39_v17, %v105_v13  ;;  %v110_v23 = vrot.slane %v39_v17, %v109_v14  ;;  %v114_v24 = vrot.slane %v39_v17, %v113_v15  ;;  %v118_v25 = vrot.slane %v39_v17, %v117_v16 }
   0xa   :  { %628 = vset.pattern.permute.xlu1 %v654_v2  ;;  %157 = vperm.xlu0 %626, %v29_v4   ;;  %v54_v26 = vrot.slane %v39_v17, %v53_v18  ;;  %v58_v27 = vrot.slane %v39_v17, %v57_v19  ;;  %v62_v28 = vrot.slane %v39_v17, %v61_v20 }
   0xb   :  { %162 = vperm.xlu1 %628, %v30_v5   ;;  %v66_v29 = vrot.slane %v39_v17, %v65_v21  ;;  %v126_v30 = vrot.slane %v106_v22, %v105_v13  ;;  %v130_v31 = vrot.slane %v110_v23, %v105_v13  ;;  %v134_v32 = vrot.slane %v114_v24, %v105_v13 }
   0xc   :  { %v138_v33 = vrot.slane %v118_v25, %v105_v13  ;;  %v74_v34 = vrot.slane %v54_v26, %v53_v18  ;;  %v78_v35 = vrot.slane %v58_v27, %v53_v18  ;;  %v82_v36 = vrot.slane %v62_v28, %v53_v18  ;;  %v31_v25 = vld [vmem:[%s761_s3] sm:$0xff]  ;;  %v32_v26 = vld [vmem:[%s761_s3 + $0x8] sm:$0xff]  ;;  %v33_v27 = vld [vmem:[%s761_s3 + $0x10] sm:$0xf] }
   0xd   :  { %v86_v37 = vrot.slane %v66_v29, %v53_v18 }
   0xe   :  { %183 = vperm.xlu0 %626, %v34_v6  }
   0xf   :  { %188 = vperm.xlu1 %628, %v35_v7  }
  0x12   :  { %193 = vperm.xlu0 %626, %v36_v8  }
  0x13   :  { %399 = vperm.xlu1 %628, %v38_v9  }
  0x81   :  { %v97_v38 = vpop.permute.xlu1 %96  ;;  %v43_v39 = vpop.permute.xlu0 %42 }
  0x82   :  { %v139_v40 = vmul.f32 %v126_v30, %v97_v38  ;;  %v140_v41 = vmul.f32 %v130_v31, %v97_v38  ;;  %v141_v42 = vmul.f32 %v134_v32, %v97_v38  ;;  %v142_v43 = vmul.f32 %v138_v33, %v97_v38 }
  0x83   :  { %v87_v44 = vmul.f32 %v74_v34, %v43_v39  ;;  %v88_v45 = vmul.f32 %v78_v35, %v43_v39  ;;  %v89_v46 = vmul.f32 %v82_v36, %v43_v39  ;;  %v90_v47 = vmul.f32 %v86_v37, %v43_v39 }
  0x85   :  { %v101_v48 = vpop.permute.xlu1 %100  ;;  %v48_v49 = vpop.permute.xlu0 %47  ;;  %v147_v58 = vadd.f32 %v139_v40, %v87_v44  ;;  %v149_v59 = vadd.f32 %v141_v42, %v89_v46  ;;  %v148_v60 = vadd.f32 %v140_v41, %v88_v45  ;;  %v150_v61 = vadd.f32 %v142_v43, %v90_v47 }
  0x86   :  { %v143_v50 = vmul.f32 %v126_v30, %v101_v48  ;;  %v144_v51 = vmul.f32 %v130_v31, %v101_v48  ;;  %v145_v52 = vmul.f32 %v134_v32, %v101_v48  ;;  %v146_v53 = vmul.f32 %v138_v33, %v101_v48 }
  0x87   :  { %v91_v54 = vmul.f32 %v74_v34, %v48_v49  ;;  %v92_v55 = vmul.f32 %v78_v35, %v48_v49  ;;  %v93_v56 = vmul.f32 %v82_v36, %v48_v49  ;;  %v94_v57 = vmul.f32 %v86_v37, %v48_v49 }
  0x89   :  { %v158_v62 = vpop.permute.xlu0 %157  ;;  %v151_v63 = vadd.f32 %v143_v50, %v91_v54  ;;  %v153_v0 = vadd.f32 %v145_v52, %v93_v56  ;;  %v152_v1 = vadd.f32 %v144_v51, %v92_v55  ;;  %v154_v2 = vadd.f32 %v146_v53, %v94_v57 }
  0x8a   :  { %v165_v3 = vadd.f32 %v158_v62, %v147_v58  ;;  %v167_v4 = vadd.f32 %v158_v62, %v149_v59  ;;  %v163_v5 = vpop.permute.xlu1 %162  ;;  %v166_v6 = vadd.f32 %v158_v62, %v148_v60  ;;  %v168_v7 = vadd.f32 %v158_v62, %v150_v61 }
  0x8b   :  { %v169_v8 = vadd.f32 %v163_v5, %v151_v63  ;;  %v171_v9 = vadd.f32 %v163_v5, %v153_v0  ;;  %v170_v11 = vadd.f32 %v163_v5, %v152_v1  ;;  %v172_v12 = vadd.f32 %v163_v5, %v154_v2 }
  0x8c   :  { %v174_v13 = vmax.f32 %v166_v6, 0.0  ;;  %v176_v14 = vmax.f32 %v168_v7, 0.0  ;;  %v173_v15 = vmax.f32 %v165_v3, 0.0  ;;  %v175_v16 = vmax.f32 %v167_v4, 0.0  ;;  %v37_v6 = vld [vmem:[%s763_s5] sm:$0xf] }
  0x8d   :  { %v178_v17 = vmax.f32 %v170_v11, 0.0  ;;  %v180_v18 = vmax.f32 %v172_v12, 0.0  ;;  %v177_v19 = vmax.f32 %v169_v8, 0.0  ;;  %v179_v20 = vmax.f32 %v171_v9, 0.0  ;;  %v184_v28 = vpop.permute.xlu0 %183  ;;  %s629_s5 = scalar_lea.vmem %s578_s22, 256 }
  0x8e   :  { %v189_v33 = vpop.permute.xlu1 %188  ;;  %p630_p0 = scmp.ne.s32.totalorder %s578_s22, %s629_s5  ;;  %p635_p2 = scmp.lt.s32.totalorder %s629_s5, %s629_s5 }
  0x8f   :  { %v601_v21 = vpack.c.bf16 %v178_v17, %v174_v13  ;;  %v607_v22 = vpack.c.bf16 %v180_v18, %v176_v14  ;;  %v604_v23 = vpack.c.bf16 %v177_v19, %v173_v15  ;;  %v610_v24 = vpack.c.bf16 %v179_v20, %v175_v16 }
  0x90   :  { %p636_p3 = por %p635_p2, %p634_p1 }
  0x91   :  { %603 = vmatprep.subr.msk.bf16.mxu0 %vm602_vm2, %v601_v21  ;;  %609 = vmatprep.subr.msk.bf16.mxu1 %vm602_vm2, %v607_v22  ;;  %v194_v46 = vpop.permute.xlu0 %193 }
  0x92   :  { %606 = vmatpush1.bf16.msk.msra.mxu0 %vm602_vm2, %v604_v23  ;;  %612 = vmatpush1.bf16.msk.msra.mxu1 %vm602_vm2, %v610_v24  ;;  %v400_v7 = vpop.permute.xlu1 %399  ;;  %p637_p4 = pnand %p636_p3, %p630_p0 }
  0x95   :  { %587 = vmatmul.mubr.msk.f32.vlgmr.msra.gmra.mrb[0].mxu0 %vm196_vm3, %v31_v25  ;;  %592 = vmatmul.mubr.msk.f32.vlgmr.msra.gmra.mrb[0].mxu1 %vm196_vm3, %v31_v25 }
  0x96   :  { %289 = vmatprep.mubr.f32.mxu0 %v655_v10  ;;  %372 = vmatprep.mubr.f32.mxu1 %v655_v10 }
  0x99   :  { %588 = vmatmul.mubr.msk.f32.gmra.mrb[2].mxu0 %vm196_vm3, %v32_v26  ;;  %593 = vmatmul.mubr.msk.f32.gmra.mrb[2].mxu1 %vm196_vm3, %v32_v26 }
  0x9a   :  { %295 = vmatprep.mubr.f32.mxu0 %v655_v10  ;;  %378 = vmatprep.mubr.f32.mxu1 %v655_v10 }
  0x9d   :  { %589 = vmatmul.mubr.msk.f32.gmra.mrb[4].mxu0 %vm196_vm3, %v33_v27  ;;  %594 = vmatmul.mubr.msk.f32.gmra.mrb[4].mxu1 %vm196_vm3, %v33_v27 }
  0x9e   :  { %483 = vmatprep.mubr.f32.mxu0 %v655_v10  ;;  %554 = vmatprep.mubr.f32.mxu1 %v655_v10 }
 0x168   :  { %v285_v29 = vpop.f32.mrb[0].mxu0  ;;  %v368_v30 = vpop.f32.mrb[0].mxu1 }
 0x169   :  { %v287_v31 = vpop.f32.mrb[1].mxu0  ;;  %v370_v32 = vpop.f32.mrb[1].mxu1  ;;  %v286_v34 = vadd.f32 %v285_v29, %v184_v28  ;;  %v369_v35 = vadd.f32 %v368_v30, %v184_v28 }
 0x16a   :  { %v288_v36 = vadd.f32 %v287_v31, %v184_v28  ;;  %v371_v37 = vadd.f32 %v370_v32, %v184_v28 }
 0x16b   :  { %v385_v10 = vmax.f32 %v286_v34, 0.0  ;;  %v387_v47 = vmax.f32 %v369_v35, 0.0 }
 0x16c   :  { %v291_v38 = vpop.f32.mrb[2].mxu0  ;;  %v374_v39 = vpop.f32.mrb[2].mxu1  ;;  %v386_v50 = vmax.f32 %v288_v36, 0.0  ;;  %v388_v51 = vmax.f32 %v371_v37, 0.0 }
 0x16d   :  { %v292_v40 = vadd.f32 %v291_v38, %v189_v33  ;;  %v375_v41 = vadd.f32 %v374_v39, %v189_v33  ;;  %v293_v42 = vpop.f32.mrb[3].mxu0  ;;  %v376_v43 = vpop.f32.mrb[3].mxu1 }
 0x16e   :  { %v294_v44 = vadd.f32 %v293_v42, %v189_v33  ;;  %v377_v45 = vadd.f32 %v376_v43, %v189_v33 }
 0x16f   :  { %v389_v48 = vmax.f32 %v292_v40, 0.0  ;;  %v391_v49 = vmax.f32 %v375_v41, 0.0 }
 0x170   :  { %v390_v52 = vmax.f32 %v294_v44, 0.0  ;;  %v392_v53 = vmax.f32 %v377_v45, 0.0  ;;  %v297_v54 = vpop.f32.mrb[4].mxu0  ;;  %v380_v55 = vpop.f32.mrb[4].mxu1 }
 0x171   :  { %v615_v56 = vpack.c.bf16 %v389_v48, %v385_v10  ;;  %v619_v57 = vpack.c.bf16 %v391_v49, %v387_v47  ;;  %v299_v58 = vpop.f32.mrb[5].mxu0  ;;  %v382_v59 = vpop.f32.mrb[5].mxu1  ;;  %v298_v0 = vadd.f32 %v297_v54, %v194_v46  ;;  %v381_v1 = vadd.f32 %v380_v55, %v194_v46 }
 0x172   :  { %v613_v60 = vpack.c.bf16 %v390_v52, %v386_v50  ;;  %v617_v61 = vpack.c.bf16 %v392_v53, %v388_v51  ;;  %v300_v62 = vadd.f32 %v299_v58, %v194_v46  ;;  %v383_v63 = vadd.f32 %v382_v59, %v194_v46 }
 0x173   :  { %v393_v4 = vmax.f32 %v298_v0, 0.0  ;;  %v395_v5 = vmax.f32 %v381_v1, 0.0 }
 0x174   :  { %v394_v2 = vmax.f32 %v300_v62, 0.0  ;;  %v396_v3 = vmax.f32 %v383_v63, 0.0  ;;  %614 = vmatprep.subr.bf16.mxu0 %v613_v60  ;;  %618 = vmatprep.subr.bf16.mxu1 %v617_v61 }
 0x175   :  { %616 = vmatpush1.bf16.msra.mxu0 %v615_v56  ;;  %620 = vmatpush1.bf16.msra.mxu1 %v619_v57 }
 0x176   :  { %595 = vmatprep.subr.msk.mxu0 %vm406_vm4, %v394_v2  ;;  %598 = vmatprep.subr.msk.mxu1 %vm406_vm4, %v396_v3 }
 0x179   :  { %596 = vmatpush1.msk.msra.mxu0 %vm406_vm4, %v393_v4  ;;  %599 = vmatpush1.msk.msra.mxu1 %vm406_vm4, %v395_v5 }
 0x17a   :  { %597 = vmatmul.mubr.msk.f32.vlgmr.msra.gmra.mrb[6].mxu0 %vm402_vm5, %v37_v6  ;;  %600 = vmatmul.mubr.msk.f32.vlgmr.msra.gmra.mrb[6].mxu1 %vm402_vm5, %v37_v6 }
 0x24d   :  { %v485_v8 = vpop.f32.mrb[6].mxu0  ;;  %v556_v9 = vpop.f32.mrb[6].mxu1 }
 0x24e   :  { %v486_v11 = vadd.f32 %v485_v8, %v400_v7  ;;  %v557_v12 = vadd.f32 %v556_v9, %v400_v7  ;;  %v487_v13 = vpop.f32.mrb[7].mxu0  ;;  %v558_v14 = vpop.f32.mrb[7].mxu1 }
 0x24f   :  { %v488_v15 = vadd.f32 %v487_v13, %v400_v7  ;;  %v559_v16 = vadd.f32 %v558_v14, %v400_v7 }
 0x251   :  { %v565_v17 = vcombine.low %v486_v11, %v488_v15  ;;  %v566_v18 = vcombine.low %v557_v12, %v559_v16 }
 0x253   :  { %569 = vst [vmem:[#allocation2] sm:$0xff] %v565_v17  ;;  %570 = vst [vmem:[#allocation2 + $0x8] sm:$0xff] %v566_v18 }
 0x254   :  { %640 = shalt.err (!%p637_p4)
}
 0x255   :  { %s641_s25 = scalar_lea.hbm %s765_s7, 256 }
 0x256   :  { %p642_p5 = scmp.ne.s32.totalorder %s765_s7, %s641_s25  ;;  %p645_p6 = scmp.lt.u32.totalorder %s641_s25, %s765_s7 }
 0x258   :  { %p647_p7 = pnand %p645_p6, %p642_p5 }
 0x25a   :  { %650 = shalt.err (!%p647_p7)
}
 0x25b   :  { %580 = dma.vmem_to_hbm [thread:$0]  %s578_s22, 256, %s765_s7, [#allocation3]  }
 0x25c   :  { %651 = dma.done.wait [#allocation3], 256  }
 0x25d   :  { %652 = vsyncadd [#allocation3], 4294967040 }
 0x25e   :  { %584 = vsyncpa [#allocation3], 1 }

</bundles_post_ra>
